<compile_context>
chip_gen: v7x
topology: tpu7x:2x2x1
jax: 0.10.0
libtpu: 0.0.40
codegen_flags: <defaults>
</compile_context>

<pallas_src>
import functools

import jax
import jax.numpy as jnp
from jax.experimental import pallas as pl
from jax.experimental.pallas import tpu as pltpu  # noqa: F401  (TPU backend)

LANES = 128            # every packed piece spans the full 128 lanes
_W1, _B1 = 0, 128      # static row offsets inside the packed parameter slab
_W2, _B2 = 136, 264    # (all multiples of 8 -> (8,128)-tile-aligned views)
_W3, _B3 = 272, 400
_W4, _B4 = 408, 536
_PARAM_ROWS = 544      # 4 * 128 weight rows + 4 * 8 bias rows


def dqn_kernel(x_ref, p_ref, out_ref):
    """Whole forward pass: 4 matmuls + 2 ReLUs on one (B_pad, 128) slab."""
    w = lambda off: p_ref[off:off + LANES, :]   # (128, 128) weight view
    b = lambda off: p_ref[off:off + 1, :]       # (1, 128)   bias view

    x = x_ref[...]
    # Shared trunk.
    h1 = jnp.maximum(
        jnp.dot(x, w(_W1), preferred_element_type=jnp.float32) + b(_B1), 0.0)
    h = jnp.dot(h1, w(_W2), preferred_element_type=jnp.float32) + b(_B2)
    # All per-qubit heads fused into two matmuls (W3 stacked, W4 block-diag).
    a1 = jnp.maximum(
        jnp.dot(h, w(_W3), preferred_element_type=jnp.float32) + b(_B3), 0.0)
    q = jnp.dot(a1, w(_W4), preferred_element_type=jnp.float32) + b(_B4)
    # Single lane-dense store of the whole (B_pad, 128) slab.
    out_ref[...] = q.astype(out_ref.dtype)


def prepare_params(params, num_of_qubits, action_size):
    """One-time packing of all 8 parameter arrays into a (544, 128) f32 slab.

    Call this OFF the hot path (once per parameter update), not per forward.
    Layout (row ranges): W1 [0,128) | b1 [128,136) | W2 [136,264) | b2 [264,272)
                         W3_all [272,400) | b3_all [400,408)
                         W4_blockdiag [408,536) | b4_all [536,544)
    Every weight is zero-padded to (128, 128); every bias lives in row 0 of an
    (8, 128) block.  Zero padding keeps the fused math exact.
    """
    w1, b1, w2, b2, w3, b3, w4, b4 = params
    S4, S8 = w1.shape
    Q, _, A2 = w3.shape
    A = action_size
    assert Q == num_of_qubits
    assert max(S4, S8, Q * A2, Q * A) <= LANES, (
        "single-slab packed layout assumes every layer width fits in 128 lanes")

    def pad_w(m):                       # (K, N) -> (128, 128), zero padded
        return jnp.pad(m.astype(jnp.float32),
                       ((0, LANES - m.shape[0]), (0, LANES - m.shape[1])))

    def pad_b(v):                       # (N,)/(1,N) -> (8, 128), bias in row 0
        v = v.reshape(1, -1).astype(jnp.float32)
        return jnp.pad(v, ((0, 7), (0, LANES - v.shape[1])))

    # Stack per-qubit first-layer weights q-major: (Q, S4, A2) -> (S4, Q*A2).
    w3_all = jnp.transpose(w3, (1, 0, 2)).reshape(S4, Q * A2)
    b3_all = b3.reshape(1, Q * A2)
    # Block-diagonal second-layer weights: (Q, A2, A) -> (Q*A2, Q*A).
    eye_q = jnp.eye(Q, dtype=w4.dtype)
    w4_blk = jnp.einsum('qio,qp->qipo', w4, eye_q).reshape(Q * A2, Q * A)
    b4_all = b4.reshape(1, Q * A)

    packed = jnp.concatenate([
        pad_w(w1), pad_b(b1),
        pad_w(w2), pad_b(b2),
        pad_w(w3_all), pad_b(b3_all),
        pad_w(w4_blk), pad_b(b4_all)], axis=0)
    assert packed.shape == (_PARAM_ROWS, LANES)
    return packed


@functools.partial(jax.jit, static_argnames=("num_of_qubits", "action_size"))
def dqn_forward(state, packed_params, *, num_of_qubits, action_size):
    """state: (B, S4) float32; packed_params from prepare_params().
    Returns (num_of_qubits, B, action_size)."""
    B, S4 = state.shape
    Q, A = num_of_qubits, action_size

    # Per-call plumbing is minimal: pad batch to a multiple of 8 sublanes and
    # the input features to 128 lanes (zeros match the zero-padded W1 rows).
    B_pad = max(8, ((B + 7) // 8) * 8)
    x_pad = jnp.pad(state.astype(jnp.float32),
                    ((0, B_pad - B), (0, LANES - S4)))

    out = pl.pallas_call(
        dqn_kernel,
        out_shape=jax.ShapeDtypeStruct((B_pad, LANES), jnp.float32),
    )(x_pad, packed_params)

    # Lane-dense (B_pad, 128) slab -> (Q, B, A); padded rows/cols dropped here.
    out = out[:B, :Q * A].reshape(B, Q, A)
    return jnp.transpose(out, (1, 0, 2))


def init_params(key, state_size, action_size, num_of_qubits):
    """Deterministic synthetic init. Weights stored (in, out)."""
    S4 = state_size * 4
    S8 = state_size * 8
    A2 = action_size * 2
    A = action_size
    ks = jax.random.split(key, 8)
    scale = 0.1
    w1 = scale * jax.random.normal(ks[0], (S4, S8), jnp.float32)
    b1 = scale * jax.random.normal(ks[1], (1, S8), jnp.float32)
    w2 = scale * jax.random.normal(ks[2], (S8, S4), jnp.float32)
    b2 = scale * jax.random.normal(ks[3], (1, S4), jnp.float32)
    w3 = scale * jax.random.normal(ks[4], (num_of_qubits, S4, A2), jnp.float32)
    b3 = scale * jax.random.normal(ks[5], (num_of_qubits, A2), jnp.float32)
    w4 = scale * jax.random.normal(ks[6], (num_of_qubits, A2, A), jnp.float32)
    b4 = scale * jax.random.normal(ks[7], (num_of_qubits, A), jnp.float32)
    return (w1, b1, w2, b2, w3, b3, w4, b4)


def reference_forward(state, params):
    """Pure-JAX reference matching the PyTorch module semantics."""
    w1, b1, w2, b2, w3, b3, w4, b4 = params
    h = jnp.maximum(state @ w1 + b1, 0.0) @ w2 + b2
    a1 = jnp.maximum(jnp.einsum('bi,qio->qbo', h, w3) + b3[:, None, :], 0.0)
    q = jnp.einsum('qbi,qio->qbo', a1, w4) + b4[:, None, :]
    return q


if __name__ == "__main__":
    # Small shapes consistent with the module's forward.
    state_size = 8       # -> input dim 32, trunk hidden 64
    action_size = 4      # -> head hidden 8, head output 4
    num_of_qubits = 3
    batch = 2

    key = jax.random.PRNGKey(0)
    kx, kp = jax.random.split(key)
    state = jax.random.normal(kx, (batch, state_size * 4), jnp.float32)
    params = init_params(kp, state_size, action_size, num_of_qubits)

    # One-time parameter packing (off the hot path).
    packed = jax.block_until_ready(
        prepare_params(params, num_of_qubits, action_size))

    out = dqn_forward(state, packed,
                      num_of_qubits=num_of_qubits, action_size=action_size)
    out = jax.block_until_ready(out)

    ref = reference_forward(state, params)
    assert out.shape == (num_of_qubits, batch, action_size)
    assert jnp.allclose(out, ref, atol=1e-4, rtol=1e-4)

    print("KERNEL_OK")
</pallas_src>

<mosaic_0001>
module attributes {stable_mosaic.version = 11 : i64} {
  func.func @dqn_kernel(%arg0: memref<8x128xf32, #tpu.memory_space<vmem>>, %arg1: memref<544x128xf32, #tpu.memory_space<vmem>>, %arg2: memref<8x128xf32, #tpu.memory_space<vmem>>) attributes {dimension_semantics = [], scalar_prefetch = 0 : i64, scratch_operands = 0 : i64, tpu.core_type = #tpu.core_type<tc>} {
    %c0 = arith.constant 0 : index
    %c0_0 = arith.constant 0 : index
    %0 = vector.load %arg0[%c0, %c0_0] : memref<8x128xf32, #tpu.memory_space<vmem>>, vector<8x128xf32>
    %c0_1 = arith.constant 0 : index
    %c0_2 = arith.constant 0 : index
    %1 = vector.load %arg1[%c0_1, %c0_2] : memref<544x128xf32, #tpu.memory_space<vmem>>, vector<128x128xf32>
    %cst = arith.constant dense<0.000000e+00> : vector<8x128xf32>
    %2 = tpu.matmul %0, %1, %cst {dimension_numbers = #tpu.dot_dimension_numbers<[1], [0], [0], [1], [0, 0, 1, 1], [], []>} : vector<8x128xf32>, vector<128x128xf32>, vector<8x128xf32> -> vector<8x128xf32>
    %c128 = arith.constant 128 : index
    %c0_3 = arith.constant 0 : index
    %3 = vector.load %arg1[%c128, %c0_3] : memref<544x128xf32, #tpu.memory_space<vmem>>, vector<1x128xf32>
    %4 = vector.broadcast %3 : vector<1x128xf32> to vector<8x128xf32>
    %5 = arith.addf %2, %4 : vector<8x128xf32>
    %cst_4 = arith.constant 0.000000e+00 : f32
    %6 = vector.broadcast %cst_4 : f32 to vector<8x128xf32>
    %7 = arith.maximumf %5, %6 : vector<8x128xf32>
    %c136 = arith.constant 136 : index
    %c0_5 = arith.constant 0 : index
    %8 = vector.load %arg1[%c136, %c0_5] : memref<544x128xf32, #tpu.memory_space<vmem>>, vector<128x128xf32>
    %cst_6 = arith.constant dense<0.000000e+00> : vector<8x128xf32>
    %9 = tpu.matmul %7, %8, %cst_6 {dimension_numbers = #tpu.dot_dimension_numbers<[1], [0], [0], [1], [0, 0, 1, 1], [], []>} : vector<8x128xf32>, vector<128x128xf32>, vector<8x128xf32> -> vector<8x128xf32>
    %c264 = arith.constant 264 : index
    %c0_7 = arith.constant 0 : index
    %10 = vector.load %arg1[%c264, %c0_7] : memref<544x128xf32, #tpu.memory_space<vmem>>, vector<1x128xf32>
    %11 = vector.broadcast %10 : vector<1x128xf32> to vector<8x128xf32>
    %12 = arith.addf %9, %11 : vector<8x128xf32>
    %c272 = arith.constant 272 : index
    %c0_8 = arith.constant 0 : index
    %13 = vector.load %arg1[%c272, %c0_8] : memref<544x128xf32, #tpu.memory_space<vmem>>, vector<128x128xf32>
    %cst_9 = arith.constant dense<0.000000e+00> : vector<8x128xf32>
    %14 = tpu.matmul %12, %13, %cst_9 {dimension_numbers = #tpu.dot_dimension_numbers<[1], [0], [0], [1], [0, 0, 1, 1], [], []>} : vector<8x128xf32>, vector<128x128xf32>, vector<8x128xf32> -> vector<8x128xf32>
    %c400 = arith.constant 400 : index
    %c0_10 = arith.constant 0 : index
    %15 = vector.load %arg1[%c400, %c0_10] : memref<544x128xf32, #tpu.memory_space<vmem>>, vector<1x128xf32>
    %16 = vector.broadcast %15 : vector<1x128xf32> to vector<8x128xf32>
    %17 = arith.addf %14, %16 : vector<8x128xf32>
    %cst_11 = arith.constant 0.000000e+00 : f32
    %18 = vector.broadcast %cst_11 : f32 to vector<8x128xf32>
    %19 = arith.maximumf %17, %18 : vector<8x128xf32>
    %c408 = arith.constant 408 : index
    %c0_12 = arith.constant 0 : index
    %20 = vector.load %arg1[%c408, %c0_12] : memref<544x128xf32, #tpu.memory_space<vmem>>, vector<128x128xf32>
    %cst_13 = arith.constant dense<0.000000e+00> : vector<8x128xf32>
    %21 = tpu.matmul %19, %20, %cst_13 {dimension_numbers = #tpu.dot_dimension_numbers<[1], [0], [0], [1], [0, 0, 1, 1], [], []>} : vector<8x128xf32>, vector<128x128xf32>, vector<8x128xf32> -> vector<8x128xf32>
    %c536 = arith.constant 536 : index
    %c0_14 = arith.constant 0 : index
    %22 = vector.load %arg1[%c536, %c0_14] : memref<544x128xf32, #tpu.memory_space<vmem>>, vector<1x128xf32>
    %23 = vector.broadcast %22 : vector<1x128xf32> to vector<8x128xf32>
    %24 = arith.addf %21, %23 : vector<8x128xf32>
    %c0_15 = arith.constant 0 : index
    %c0_16 = arith.constant 0 : index
    %25 = vector.load %arg2[%c0_15, %c0_16] : memref<8x128xf32, #tpu.memory_space<vmem>>, vector<8x128xf32>
    tpu.vector_store %arg2[%c0_15, %c0_16], %24 {strides = array<i32>} : memref<8x128xf32, #tpu.memory_space<vmem>>, vector<8x128xf32>,
    return
  }
}

</mosaic_0001>

<bundles_post_ra>
// kernel: dqn_forward.1
= control target key start
LH: loop header
LB: loop body
LE: loop exit
PB: predicated region body
PF: predicated region fallthrough
CT: control target
= control target key end

     0   :  { %7 = vsyncpa [#allocation3], 0  ;;  %s736_s9 = smov [#allocation2]   ;;  %s815_s0 = inlined_call_operand.vmem [shape: f32[8,128], index: 0, kind: input, shape index: {}]   ;;  %s816_s1 = inlined_call_operand.hbm [shape: f32[544,128], index: 1, kind: input, shape index: {}]   ;;  %s817_s2 = inlined_call_operand.vmem [shape: f32[8,128], index: 2, kind: output, shape index: {}]  }
   0x1   :  { %s15_s10 = sshll.u32 %s736_s9, 4  ;;  %s712_s13 = scalar_lea.hbm %s816_s1, 8704  ;;  %s16_s10 = int_to_ptr.vmem [resolvable:$true] %s15_s10 }
   0x2   :  { %p713_p0 = scmp.ne.s32.totalorder %s816_s1, %s712_s13  ;;  %p716_p1 = scmp.lt.u32.totalorder %s712_s13, %s816_s1 }
   0x4   :  { %p718_p2 = pnand %p716_p1, %p713_p0 }
   0x6   :  { %721 = shalt.err (!%p718_p2)
}
   0x7   :  { %s722_s18 = scalar_lea.vmem %s16_s10, 8704  ;;  %p727_p4 = scmp.lt.s32.totalorder %s16_s10, %s16_s10 }
   0x8   :  { %p723_p3 = scmp.ne.s32.totalorder %s16_s10, %s722_s18  ;;  %p728_p5 = scmp.lt.s32.totalorder %s722_s18, %s722_s18 }
   0xa   :  { %p729_p6 = por %p728_p5, %p727_p4 }
   0xc   :  { %p730_p7 = pnand %p729_p6, %p723_p3 }
   0xe   :  { %733 = shalt.err (!%p730_p7)
}
   0xf   :  { %s737_s19 = smov 128   ;;  %s738_s20 = smov 8  }
  0x10   :  { %21 = dma.hbm_to_vmem [thread:$0]  %s816_s1, 8704, %s16_s10, [#allocation3], %s737_s19, %s737_s19, %s738_s20  }
  0x11   :  { %734 = dma.done.wait [#allocation3], 8704  }
  0x12   :  { %735 = vsyncadd [#allocation3], 4294958592  ;;  %v739_v0 = vmov 0.0|0.0   ;;  %vm740_vm0 = vmmov 0   ;;  %v741_v1 = vmov 0.0   ;;  %v26_v2 = vld [vmem:[#allocation2] sm:$0xff] }
  0x13   :  { %610 = vmatprep.subr.bf16.mxu0 %v739_v0  ;;  %502 = vmatprep.mubr.msk.f32.mxu0 %vm740_vm0, %v741_v1  ;;  %v27_v3 = vld [vmem:[#allocation2 + $0x8] sm:$0xff]  ;;  %v28_v4 = vld [vmem:[#allocation2 + $0x10] sm:$0xff]  ;;  %v29_v6 = vld [vmem:[#allocation2 + $0x18] sm:$0xff] }
  0x14   :  { %634 = vmatprep.subr.bf16.mxu1 %v739_v0  ;;  %537 = vmatprep.mubr.msk.f32.mxu1 %vm740_vm0, %v741_v1  ;;  %v611_v5 = vpack.c.bf16 %v27_v3, %v26_v2  ;;  %v614_v7 = vpack.c.bf16 %v29_v6, %v28_v4  ;;  %v30_v8 = vld [vmem:[#allocation2 + $0x20] sm:$0xff]  ;;  %v31_v9 = vld [vmem:[#allocation2 + $0x28] sm:$0xff]  ;;  %v119_v11 = vld [vmem:[#allocation2 + $0x90] sm:$0xff] }
  0x15   :  { %v118_v10 = vld [vmem:[#allocation2 + $0x88] sm:$0xff]  ;;  %v120_v12 = vld [vmem:[#allocation2 + $0x98] sm:$0xff]  ;;  %v121_v13 = vld [vmem:[#allocation2 + $0xa0] sm:$0xff]  ;;  %v617_v14 = vpack.c.bf16 %v31_v9, %v30_v8 }
  0x16   :  { %612 = vmatpush3.bf16.msra.mxu0 %v611_v5  ;;  %v635_v15 = vpack.c.bf16 %v119_v11, %v118_v10  ;;  %v32_v16 = vld [vmem:[#allocation2 + $0x30] sm:$0xff]  ;;  %v33_v17 = vld [vmem:[#allocation2 + $0x38] sm:$0xff]  ;;  %v638_v18 = vpack.c.bf16 %v121_v13, %v120_v12  ;;  %v122_v19 = vld [vmem:[#allocation2 + $0xa8] sm:$0xff] }
  0x17   :  { %613 = vmatprep.subr.bf16.mxu0 %v739_v0  ;;  %v123_v20 = vld [vmem:[#allocation2 + $0xb0] sm:$0xff]  ;;  %v620_v21 = vpack.c.bf16 %v33_v17, %v32_v16  ;;  %v34_v22 = vld [vmem:[#allocation2 + $0x40] sm:$0xff]  ;;  %v35_v23 = vld [vmem:[#allocation2 + $0x48] sm:$0xff] }
  0x18   :  { %636 = vmatpush3.bf16.msra.mxu1 %v635_v15  ;;  %v641_v24 = vpack.c.bf16 %v123_v20, %v122_v19  ;;  %v124_v25 = vld [vmem:[#allocation2 + $0xb8] sm:$0xff]  ;;  %v125_v26 = vld [vmem:[#allocation2 + $0xc0] sm:$0xff]  ;;  %v623_v27 = vpack.c.bf16 %v35_v23, %v34_v22  ;;  %v36_v28 = vld [vmem:[#allocation2 + $0x50] sm:$0xff] }
  0x19   :  { %637 = vmatprep.subr.bf16.mxu1 %v739_v0  ;;  %v37_v29 = vld [vmem:[#allocation2 + $0x58] sm:$0xff]  ;;  %v644_v30 = vpack.c.bf16 %v125_v26, %v124_v25  ;;  %v126_v31 = vld [vmem:[#allocation2 + $0xc8] sm:$0xff]  ;;  %v127_v32 = vld [vmem:[#allocation2 + $0xd0] sm:$0xff] }
  0x1a   :  { %615 = vmatpush3.bf16.msra.mxu0 %v614_v7  ;;  %v626_v33 = vpack.c.bf16 %v37_v29, %v36_v28  ;;  %v38_v34 = vld [vmem:[#allocation2 + $0x60] sm:$0xff]  ;;  %v39_v35 = vld [vmem:[#allocation2 + $0x68] sm:$0xff]  ;;  %v647_v36 = vpack.c.bf16 %v127_v32, %v126_v31  ;;  %v128_v37 = vld [vmem:[#allocation2 + $0xd8] sm:$0xff] }
  0x1b   :  { %616 = vmatprep.subr.bf16.mxu0 %v739_v0  ;;  %v129_v38 = vld [vmem:[#allocation2 + $0xe0] sm:$0xff]  ;;  %v629_v39 = vpack.c.bf16 %v39_v35, %v38_v34  ;;  %v40_v40 = vld [vmem:[#allocation2 + $0x70] sm:$0xff]  ;;  %v41_v41 = vld [vmem:[#allocation2 + $0x78] sm:$0xff] }
  0x1c   :  { %639 = vmatpush3.bf16.msra.mxu1 %v638_v18  ;;  %v650_v42 = vpack.c.bf16 %v129_v38, %v128_v37  ;;  %v130_v43 = vld [vmem:[#allocation2 + $0xe8] sm:$0xff]  ;;  %v131_v44 = vld [vmem:[#allocation2 + $0xf0] sm:$0xff]  ;;  %v632_v45 = vpack.c.bf16 %v41_v41, %v40_v40  ;;  %v25_v47 = vld [vmem:[%s815_s0] sm:$0xff] }
  0x1d   :  { %640 = vmatprep.subr.bf16.mxu1 %v739_v0  ;;  %v653_v46 = vpack.c.bf16 %v131_v44, %v130_v43  ;;  %v132_v48 = vld [vmem:[#allocation2 + $0xf8] sm:$0xff]  ;;  %v133_v49 = vld [vmem:[#allocation2 + $0x100] sm:$0xff]  ;;  %v209_v51 = vld [vmem:[#allocation2 + $0x110] sm:$0xff] }
  0x1e   :  { %618 = vmatpush3.bf16.msra.mxu0 %v617_v14  ;;  %v656_v50 = vpack.c.bf16 %v133_v49, %v132_v48  ;;  %v210_v52 = vld [vmem:[#allocation2 + $0x118] sm:$0xff]  ;;  %v211_v53 = vld [vmem:[#allocation2 + $0x120] sm:$0xff]  ;;  %v212_v55 = vld [vmem:[#allocation2 + $0x128] sm:$0xff] }
  0x1f   :  { %619 = vmatprep.subr.bf16.mxu0 %v739_v0  ;;  %v659_v54 = vpack.c.bf16 %v210_v52, %v209_v51  ;;  %v662_v56 = vpack.c.bf16 %v212_v55, %v211_v53  ;;  %v213_v57 = vld [vmem:[#allocation2 + $0x130] sm:$0xff]  ;;  %v214_v58 = vld [vmem:[#allocation2 + $0x138] sm:$0xff]  ;;  %v215_v60 = vld [vmem:[#allocation2 + $0x140] sm:$0xff] }
  0x20   :  { %642 = vmatpush3.bf16.msra.mxu1 %v641_v24  ;;  %v665_v59 = vpack.c.bf16 %v214_v58, %v213_v57  ;;  %v216_v61 = vld [vmem:[#allocation2 + $0x148] sm:$0xff]  ;;  %v217_v63 = vld [vmem:[#allocation2 + $0x150] sm:$0xff]  ;;  %v218_v2 = vld [vmem:[#allocation2 + $0x158] sm:$0xff] }
  0x21   :  { %643 = vmatprep.subr.bf16.mxu1 %v739_v0  ;;  %v668_v62 = vpack.c.bf16 %v216_v61, %v215_v60  ;;  %v671_v3 = vpack.c.bf16 %v218_v2, %v217_v63  ;;  %v219_v4 = vld [vmem:[#allocation2 + $0x160] sm:$0xff]  ;;  %v220_v5 = vld [vmem:[#allocation2 + $0x168] sm:$0xff]  ;;  %v221_v7 = vld [vmem:[#allocation2 + $0x170] sm:$0xff] }
  0x22   :  { %621 = vmatpush3.bf16.msra.mxu0 %v620_v21  ;;  %v674_v6 = vpack.c.bf16 %v220_v5, %v219_v4  ;;  %v222_v8 = vld [vmem:[#allocation2 + $0x178] sm:$0xff]  ;;  %v398_v10 = vld [vmem:[#allocation2 + $0x80] ss:$0 sm:$0xff]  ;;  %v224_v16 = vld [vmem:[#allocation2 + $0x188] sm:$0xff] }
  0x23   :  { %622 = vmatprep.subr.bf16.mxu0 %v739_v0  ;;  %v677_v9 = vpack.c.bf16 %v222_v8, %v221_v7  ;;  %v223_v15 = vld [vmem:[#allocation2 + $0x180] sm:$0xff]  ;;  %v301_v18 = vld [vmem:[#allocation2 + $0x198] sm:$0xff]  ;;  %v303_v20 = vld [vmem:[#allocation2 + $0x1a8] sm:$0xff] }
  0x24   :  { %645 = vmatpush3.bf16.msra.mxu1 %v644_v30  ;;  %v680_v17 = vpack.c.bf16 %v224_v16, %v223_v15  ;;  %v302_v19 = vld [vmem:[#allocation2 + $0x1a0] sm:$0xff]  ;;  %v304_v22 = vld [vmem:[#allocation2 + $0x1b0] sm:$0xff]  ;;  %v305_v24 = vld [vmem:[#allocation2 + $0x1b8] sm:$0xff] }
  0x25   :  { %646 = vmatprep.subr.bf16.mxu1 %v739_v0  ;;  %v683_v21 = vpack.c.bf16 %v302_v19, %v301_v18  ;;  %v686_v23 = vpack.c.bf16 %v304_v22, %v303_v20  ;;  %v306_v25 = vld [vmem:[#allocation2 + $0x1c0] sm:$0xff]  ;;  %v309_v29 = vld [vmem:[#allocation2 + $0x1d8] sm:$0xff]  ;;  %v311_v32 = vld [vmem:[#allocation2 + $0x1e8] sm:$0xff] }
  0x26   :  { %624 = vmatpush3.bf16.msra.mxu0 %v623_v27  ;;  %v689_v26 = vpack.c.bf16 %v306_v25, %v305_v24  ;;  %v308_v27 = vld [vmem:[#allocation2 + $0x1d0] sm:$0xff]  ;;  %v310_v30 = vld [vmem:[#allocation2 + $0x1e0] sm:$0xff]  ;;  %v313_v35 = vld [vmem:[#allocation2 + $0x1f8] sm:$0xff] }
  0x27   :  { %625 = vmatprep.subr.bf16.mxu0 %v739_v0  ;;  %v695_v31 = vpack.c.bf16 %v310_v30, %v309_v29  ;;  %v399_v38 = vld [vmem:[#allocation2 + $0x108] ss:$0 sm:$0xff]  ;;  %v316_v43 = vld [vmem:[#allocation2 + $0x210] sm:$0xff] }
  0x28   :  { %648 = vmatpush3.bf16.msra.mxu1 %v647_v36  ;;  %v314_v36 = vld [vmem:[#allocation2 + $0x200] sm:$0xff] }
  0x29   :  { %649 = vmatprep.subr.bf16.mxu1 %v739_v0  ;;  %v701_v37 = vpack.c.bf16 %v314_v36, %v313_v35 }
  0x2a   :  { %627 = vmatpush3.bf16.msra.mxu0 %v626_v33  ;;  %v312_v33 = vld [vmem:[#allocation2 + $0x1f0] sm:$0xff] }
  0x2b   :  { %628 = vmatprep.subr.bf16.mxu0 %v739_v0  ;;  %v698_v34 = vpack.c.bf16 %v312_v33, %v311_v32 }
  0x2c   :  { %651 = vmatpush3.bf16.msra.mxu1 %v650_v42  ;;  %v315_v42 = vld [vmem:[#allocation2 + $0x208] sm:$0xff] }
  0x2d   :  { %652 = vmatprep.subr.bf16.mxu1 %v739_v0  ;;  %v704_v44 = vpack.c.bf16 %v316_v43, %v315_v42 }
  0x2e   :  { %630 = vmatpush3.bf16.msra.mxu0 %v629_v39 }
  0x2f   :  { %631 = vmatprep.subr.bf16.mxu0 %v739_v0 }
  0x30   :  { %654 = vmatpush3.bf16.msra.mxu1 %v653_v46 }
  0x31   :  { %655 = vmatprep.subr.bf16.mxu1 %v739_v0 }
  0x32   :  { %633 = vmatpush3.bf16.msra.mxu0 %v632_v45  ;;  %v400_v45 = vld [vmem:[#allocation2 + $0x190] ss:$0 sm:$0xff] }
  0x33   :  { %658 = vmatprep.subr.bf16.mxu0 %v739_v0 }
  0x34   :  { %657 = vmatpush3.bf16.msra.mxu1 %v656_v50  ;;  %v401_v50 = vld [vmem:[#allocation2 + $0x218] ss:$0 sm:$0xff] }
  0x35   :  { %503 = vmatmul.mubr.f32.vlgmr.msra.gmra.mrb[0].mxu0 %v25_v47  ;;  %682 = vmatprep.subr.bf16.mxu1 %v739_v0 }
  0x36   :  { %572 = vmatprep.mubr.msk.f32.mxu0 %vm740_vm0, %v741_v1  ;;  %660 = vmatpush3.bf16.msra.mxu0 %v659_v54 }
  0x37   :  { %661 = vmatprep.subr.bf16.mxu0 %v739_v0 }
  0x3a   :  { %663 = vmatpush3.bf16.msra.mxu0 %v662_v56 }
  0x3b   :  { %664 = vmatprep.subr.bf16.mxu0 %v739_v0 }
  0x3e   :  { %666 = vmatpush3.bf16.msra.mxu0 %v665_v59 }
  0x3f   :  { %667 = vmatprep.subr.bf16.mxu0 %v739_v0 }
  0x42   :  { %669 = vmatpush3.bf16.msra.mxu0 %v668_v62 }
  0x43   :  { %670 = vmatprep.subr.bf16.mxu0 %v739_v0 }
  0x46   :  { %672 = vmatpush3.bf16.msra.mxu0 %v671_v3 }
  0x47   :  { %673 = vmatprep.subr.bf16.mxu0 %v739_v0 }
  0x4a   :  { %675 = vmatpush3.bf16.msra.mxu0 %v674_v6 }
  0x4b   :  { %676 = vmatprep.subr.bf16.mxu0 %v739_v0 }
  0x4e   :  { %678 = vmatpush3.bf16.msra.mxu0 %v677_v9 }
  0x4f   :  { %679 = vmatprep.subr.bf16.mxu0 %v739_v0 }
  0x52   :  { %681 = vmatpush3.bf16.msra.mxu0 %v680_v17 }
 0x108   :  { %v113_v11 = vpop.f32.mrb[0].mxu0 }
 0x109   :  { %v114_v12 = vadd.f32 %v398_v10, %v113_v11  ;;  %v504_v13 = vpop.f32.mrb[1].mxu0 }
 0x10b   :  { %v117_v14 = vmax.f32 %v114_v12, 0.0 }
 0x10d   :  { %538 = vmatmul.mubr.f32.vlgmr.msra.gmra.mrb[0].mxu1 %v117_v14 }
 0x10e   :  { %607 = vmatprep.mubr.msk.f32.mxu1 %vm740_vm0, %v741_v1  ;;  %684 = vmatpush3.bf16.msra.mxu1 %v683_v21  ;;  %v307_v1 = vld [vmem:[#allocation2 + $0x1c8] sm:$0xff] }
 0x10f   :  { %685 = vmatprep.subr.bf16.mxu1 %v739_v0  ;;  %v692_v28 = vpack.c.bf16 %v308_v27, %v307_v1 }
 0x112   :  { %687 = vmatpush3.bf16.msra.mxu1 %v686_v23 }
 0x113   :  { %688 = vmatprep.subr.bf16.mxu1 %v739_v0 }
 0x116   :  { %690 = vmatpush3.bf16.msra.mxu1 %v689_v26 }
 0x117   :  { %691 = vmatprep.subr.bf16.mxu1 %v739_v0 }
 0x11a   :  { %693 = vmatpush3.bf16.msra.mxu1 %v692_v28 }
 0x11b   :  { %694 = vmatprep.subr.bf16.mxu1 %v739_v0 }
 0x11e   :  { %696 = vmatpush3.bf16.msra.mxu1 %v695_v31 }
 0x11f   :  { %697 = vmatprep.subr.bf16.mxu1 %v739_v0 }
 0x122   :  { %699 = vmatpush3.bf16.msra.mxu1 %v698_v34 }
 0x123   :  { %700 = vmatprep.subr.bf16.mxu1 %v739_v0 }
 0x126   :  { %702 = vmatpush3.bf16.msra.mxu1 %v701_v37 }
 0x127   :  { %703 = vmatprep.subr.bf16.mxu1 %v739_v0 }
 0x12a   :  { %705 = vmatpush3.bf16.msra.mxu1 %v704_v44 }
 0x1e0   :  { %v205_v39 = vpop.f32.mrb[0].mxu1 }
 0x1e1   :  { %v206_v40 = vadd.f32 %v399_v38, %v205_v39  ;;  %v539_v41 = vpop.f32.mrb[1].mxu1 }
 0x1e3   :  { %573 = vmatmul.mubr.f32.vlgmr.msra.gmra.mrb[2].mxu0 %v206_v40 }
 0x2b6   :  { %v296_v46 = vpop.f32.mrb[2].mxu0 }
 0x2b7   :  { %v297_v47 = vadd.f32 %v400_v45, %v296_v46  ;;  %v574_v48 = vpop.f32.mrb[3].mxu0 }
 0x2b9   :  { %v300_v49 = vmax.f32 %v297_v47, 0.0 }
 0x2bb   :  { %608 = vmatmul.mubr.f32.vlgmr.msra.gmra.mrb[2].mxu1 %v300_v49 }
 0x38e   :  { %v388_v51 = vpop.f32.mrb[2].mxu1 }
 0x38f   :  { %v389_v52 = vadd.f32 %v401_v50, %v388_v51  ;;  %v609_v53 = vpop.f32.mrb[3].mxu1 }
 0x391   :  { %392 = vst [vmem:[%s817_s2] sm:$0xff] %v389_v52 }
 0x392   :  { %397 = vsyncpa [#allocation3], 1 }

</bundles_post_ra>
